<compile_context>
chip_gen: v7x
topology: tpu7x:2x2x1
jax: 0.10.0
libtpu: 0.0.40
codegen_flags: <defaults>
</compile_context>

<pallas_src>
import jax
import jax.numpy as jnp
from jax.experimental import pallas as pl
from jax.experimental.pallas import tpu as pltpu


def _fusion_kernel(x1_ref, x2_ref, wa_ref, wb_ref, b_ref, out_ref):
    """One (C, tile_hw) spatial slab of one batch element.

      x1_ref, x2_ref : (1, C, T)  activations, spatial (lane) x channels (sublane)
      wa_ref, wb_ref : (2C, C)    fused [fc1; fc2] weights, split along K
      b_ref          : (2C, 1)    fused [b1; b2] bias
      out_ref        : (1, C, T)
    """
    C = out_ref.shape[1]
    x1 = x1_ref[0]                      # (C, T)
    x2 = x2_ref[0]                      # (C, T)

    # Single fused matmul for both 1x1 convs (no concatenated fusion tensor).
    z = (
        jnp.dot(wa_ref[...], x1, preferred_element_type=jnp.float32)
        + jnp.dot(wb_ref[...], x2, preferred_element_type=jnp.float32)
        + b_ref[...]
    )                                   # (2C, T) f32

    pre_att = z[:C]                     # static row slices: free
    y2 = z[C:]
    att = jax.nn.sigmoid(pre_att)       # exp goes to EUP; kernel is mem-bound
    out = y2 * att + x1.astype(jnp.float32) * (1.0 - att)
    out_ref[0] = out.astype(out_ref.dtype)


def adaptive_fusion(x1, x2, w1, b1, w2, b2, *, max_tile_hw=8192):
    """x1, x2: (N, C, H, W). w1, w2: (C, 2C) (Conv2d(2C, C, 1) squeezed). b1, b2: (C,)."""
    N, C, H, W = x1.shape
    HW = H * W
    C2 = 2 * C

    # NCHW -> (N, C, H*W): pure reshape of contiguous memory, no transpose/copy.
    x1r = x1.reshape(N, C, HW)
    x2r = x2.reshape(N, C, HW)

    # Split each conv weight into the half acting on x1 channels and the half
    # acting on x2 channels, then stack fc1 over fc2 along the output rows:
    #   z = Wa @ x1 + Wb @ x2 + b ;  z[:C] = fc1(fusion), z[C:] = fc2(fusion)
    wa = jnp.concatenate([w1[:, :C], w2[:, :C]], axis=0)   # (2C, C)
    wb = jnp.concatenate([w1[:, C:], w2[:, C:]], axis=0)   # (2C, C)
    bb = jnp.concatenate([b1, b2], axis=0).reshape(C2, 1)  # (2C, 1)

    # Spatial (lane) tile: as large as a conservative VMEM budget allows for
    # double-buffered x1/x2/out blocks (safe on v7x's 64 MiB VMEM), capped.
    # Legal sizes: any multiple of 128, or exactly HW (full extent).
    vmem_budget = 24 * 1024 * 1024
    bytes_per_col = 3 * C * x1.dtype.itemsize * 2        # x1+x2+out, 2x buffered
    cap = max(128, min(max_tile_hw, (vmem_budget // bytes_per_col) // 128 * 128))
    tile_hw = HW if HW <= cap else cap
    grid = (N, pl.cdiv(HW, tile_hw))                     # partial last block OK

    out = pl.pallas_call(
        _fusion_kernel,
        out_shape=jax.ShapeDtypeStruct((N, C, HW), x1.dtype),
        grid_spec=pltpu.PrefetchScalarGridSpec(
            num_scalar_prefetch=0,
            grid=grid,
            in_specs=[
                pl.BlockSpec((1, C, tile_hw), lambda n, j: (n, 0, j)),  # x1 tile
                pl.BlockSpec((1, C, tile_hw), lambda n, j: (n, 0, j)),  # x2 tile
                pl.BlockSpec((C2, C), lambda n, j: (0, 0)),             # Wa (resident)
                pl.BlockSpec((C2, C), lambda n, j: (0, 0)),             # Wb (resident)
                pl.BlockSpec((C2, 1), lambda n, j: (0, 0)),             # bias (resident)
            ],
            out_specs=pl.BlockSpec((1, C, tile_hw), lambda n, j: (n, 0, j)),
        ),
        compiler_params=pltpu.CompilerParams(
            dimension_semantics=("parallel", "parallel"),
            vmem_limit_bytes=32 * 1024 * 1024,
        ),
    )(x1r, x2r, wa, wb, bb)

    return out.reshape(N, C, H, W)


def _reference(x1, x2, w1, b1, w2, b2):
    # Plain-JAX reference of the PyTorch forward (1x1 convs as einsums).
    fusion = jnp.concatenate([x1, x2], axis=1)  # (N, 2C, H, W)

    def conv1x1(x, w, b):
        return jnp.einsum("nchw,oc->nohw", x, w) + b[None, :, None, None]

    attention = jax.nn.sigmoid(conv1x1(fusion, w1, b1))
    return conv1x1(fusion, w2, b2) * attention + x1 * (1.0 - attention)


if __name__ == "__main__":
    key = jax.random.PRNGKey(0)
    k1, k2, k3, k4, k5, k6 = jax.random.split(key, 6)

    N, C, H, W = 2, 4, 16, 16
    x1 = jax.random.normal(k1, (N, C, H, W), dtype=jnp.float32)
    x2 = jax.random.normal(k2, (N, C, H, W), dtype=jnp.float32)

    # Conv2d(2C, C, 1) parameters: weights (C, 2C), biases (C,).
    scale = 1.0 / jnp.sqrt(2.0 * C)
    w1 = jax.random.uniform(k3, (C, 2 * C), minval=-scale, maxval=scale, dtype=jnp.float32)
    b1 = jax.random.uniform(k4, (C,), minval=-scale, maxval=scale, dtype=jnp.float32)
    w2 = jax.random.uniform(k5, (C, 2 * C), minval=-scale, maxval=scale, dtype=jnp.float32)
    b2 = jax.random.uniform(k6, (C,), minval=-scale, maxval=scale, dtype=jnp.float32)

    out = adaptive_fusion(x1, x2, w1, b1, w2, b2)
    jax.block_until_ready(out)

    ref = _reference(x1, x2, w1, b1, w2, b2)
    assert out.shape == (N, C, H, W)
    assert jnp.allclose(out, ref, atol=1e-5, rtol=1e-5)

    print("KERNEL_OK")
</pallas_src>

<mosaic_0001>
module attributes {stable_mosaic.version = 11 : i64} {
  func.func @_fusion_kernel(%arg0: i32, %arg1: i32, %arg2: memref<1x4x256xf32, #tpu.memory_space<vmem>>, %arg3: memref<1x4x256xf32, #tpu.memory_space<vmem>>, %arg4: memref<8x4xf32, #tpu.memory_space<vmem>>, %arg5: memref<8x4xf32, #tpu.memory_space<vmem>>, %arg6: memref<8x1xf32, #tpu.memory_space<vmem>>, %arg7: memref<1x4x256xf32, #tpu.memory_space<vmem>>) attributes {dimension_semantics = [#tpu.dimension_semantics<parallel>, #tpu.dimension_semantics<parallel>], iteration_bounds = array<i64: 2, 1>, scalar_prefetch = 0 : i64, scratch_operands = 0 : i64, tpu.core_type = #tpu.core_type<tc>, window_params = [{transform_indices = @transform_0, window_bounds = array<i64: 1, 4, 256>}, {transform_indices = @transform_1, window_bounds = array<i64: 1, 4, 256>}, {pipeline_mode = #tpu.pipeline_mode<synchronous>, transform_indices = @transform_2, window_bounds = array<i64: 8, 4>}, {pipeline_mode = #tpu.pipeline_mode<synchronous>, transform_indices = @transform_3, window_bounds = array<i64: 8, 4>}, {pipeline_mode = #tpu.pipeline_mode<synchronous>, transform_indices = @transform_4, window_bounds = array<i64: 8, 1>}, {transform_indices = @transform_5, window_bounds = array<i64: 1, 4, 256>}]} {
    %c0 = arith.constant 0 : index
    %c0_0 = arith.constant 0 : index
    %c0_1 = arith.constant 0 : index
    %0 = vector.load %arg2[%c0, %c0_0, %c0_1] : memref<1x4x256xf32, #tpu.memory_space<vmem>>, vector<1x4x256xf32>
    %1 = vector.shape_cast %0 : vector<1x4x256xf32> to vector<4x256xf32>
    %c0_2 = arith.constant 0 : index
    %c0_3 = arith.constant 0 : index
    %c0_4 = arith.constant 0 : index
    %2 = vector.load %arg3[%c0_2, %c0_3, %c0_4] : memref<1x4x256xf32, #tpu.memory_space<vmem>>, vector<1x4x256xf32>
    %3 = vector.shape_cast %2 : vector<1x4x256xf32> to vector<4x256xf32>
    %c0_5 = arith.constant 0 : index
    %c0_6 = arith.constant 0 : index
    %4 = vector.load %arg4[%c0_5, %c0_6] : memref<8x4xf32, #tpu.memory_space<vmem>>, vector<8x4xf32>
    %cst = arith.constant dense<0.000000e+00> : vector<8x256xf32>
    %5 = tpu.matmul %4, %1, %cst {dimension_numbers = #tpu.dot_dimension_numbers<[1], [0], [0], [1], [0, 0, 1, 1], [], []>} : vector<8x4xf32>, vector<4x256xf32>, vector<8x256xf32> -> vector<8x256xf32>
    %c0_7 = arith.constant 0 : index
    %c0_8 = arith.constant 0 : index
    %6 = vector.load %arg5[%c0_7, %c0_8] : memref<8x4xf32, #tpu.memory_space<vmem>>, vector<8x4xf32>
    %cst_9 = arith.constant dense<0.000000e+00> : vector<8x256xf32>
    %7 = tpu.matmul %6, %3, %cst_9 {dimension_numbers = #tpu.dot_dimension_numbers<[1], [0], [0], [1], [0, 0, 1, 1], [], []>} : vector<8x4xf32>, vector<4x256xf32>, vector<8x256xf32> -> vector<8x256xf32>
    %8 = arith.addf %5, %7 : vector<8x256xf32>
    %c0_10 = arith.constant 0 : index
    %c0_11 = arith.constant 0 : index
    %9 = vector.load %arg6[%c0_10, %c0_11] : memref<8x1xf32, #tpu.memory_space<vmem>>, vector<8x1xf32>
    %10 = vector.broadcast %9 : vector<8x1xf32> to vector<8x256xf32>
    %11 = arith.addf %8, %10 : vector<8x256xf32>
    %12 = vector.extract_strided_slice %11 {offsets = [0, 0], sizes = [4, 256], strides = [1, 1]} : vector<8x256xf32> to vector<4x256xf32>
    %13 = vector.extract_strided_slice %11 {offsets = [4, 0], sizes = [4, 256], strides = [1, 1]} : vector<8x256xf32> to vector<4x256xf32>
    %14 = arith.negf %12 : vector<4x256xf32>
    %15 = math.exp %14 : vector<4x256xf32>
    %cst_12 = arith.constant 1.000000e+00 : f32
    %16 = vector.broadcast %cst_12 : f32 to vector<4x256xf32>
    %17 = arith.addf %16, %15 : vector<4x256xf32>
    %18 = arith.divf %16, %17 : vector<4x256xf32>
    %19 = arith.mulf %13, %18 : vector<4x256xf32>
    %cst_13 = arith.constant 1.000000e+00 : f32
    %20 = vector.broadcast %cst_13 : f32 to vector<4x256xf32>
    %21 = arith.subf %20, %18 : vector<4x256xf32>
    %22 = arith.mulf %1, %21 : vector<4x256xf32>
    %23 = arith.addf %19, %22 : vector<4x256xf32>
    %c0_14 = arith.constant 0 : index
    %c0_15 = arith.constant 0 : index
    %c0_16 = arith.constant 0 : index
    %24 = vector.load %arg7[%c0_14, %c0_15, %c0_16] : memref<1x4x256xf32, #tpu.memory_space<vmem>>, vector<1x4x256xf32>
    %25 = vector.shape_cast %24 : vector<1x4x256xf32> to vector<4x256xf32>
    %26 = vector.shape_cast %23 : vector<4x256xf32> to vector<1x4x256xf32>
    tpu.vector_store %arg7[%c0_14, %c0_15, %c0_16], %26 {strides = array<i32>} : memref<1x4x256xf32, #tpu.memory_space<vmem>>, vector<1x4x256xf32>,
    return
  }
  func.func @transform_0(%arg0: i32, %arg1: i32) -> (i32, i32, i32) {
    %c0_i32 = arith.constant 0 : i32
    %c0_i32_0 = arith.constant 0 : i32
    return %arg0, %c0_i32, %arg1 : i32, i32, i32
  }
  func.func @transform_1(%arg0: i32, %arg1: i32) -> (i32, i32, i32) {
    %c0_i32 = arith.constant 0 : i32
    %c0_i32_0 = arith.constant 0 : i32
    return %arg0, %c0_i32, %arg1 : i32, i32, i32
  }
  func.func @transform_2(%arg0: i32, %arg1: i32) -> (i32, i32) {
    %c0_i32 = arith.constant 0 : i32
    %c0_i32_0 = arith.constant 0 : i32
    %c0_i32_1 = arith.constant 0 : i32
    return %c0_i32, %c0_i32_0 : i32, i32
  }
  func.func @transform_3(%arg0: i32, %arg1: i32) -> (i32, i32) {
    %c0_i32 = arith.constant 0 : i32
    %c0_i32_0 = arith.constant 0 : i32
    %c0_i32_1 = arith.constant 0 : i32
    return %c0_i32, %c0_i32_0 : i32, i32
  }
  func.func @transform_4(%arg0: i32, %arg1: i32) -> (i32, i32) {
    %c0_i32 = arith.constant 0 : i32
    %c0_i32_0 = arith.constant 0 : i32
    %c0_i32_1 = arith.constant 0 : i32
    return %c0_i32, %c0_i32_0 : i32, i32
  }
  func.func @transform_5(%arg0: i32, %arg1: i32) -> (i32, i32, i32) {
    %c0_i32 = arith.constant 0 : i32
    %c0_i32_0 = arith.constant 0 : i32
    return %arg0, %c0_i32, %arg1 : i32, i32, i32
  }
}

</mosaic_0001>

<bundles_post_ra>
// kernel: tpu_custom_call.1
= control target key start
LH: loop header
LB: loop body
LE: loop exit
PB: predicated region body
PF: predicated region fallthrough
CT: control target
= control target key end

     0   :  { %10 = vsyncpa [#allocation3], 0  ;;  %s945_s0 = inlined_call_operand.vmem [shape: f32[2,4,256], index: 0, kind: input, shape index: {}]   ;;  %s946_s1 = inlined_call_operand.vmem [shape: f32[2,4,256], index: 1, kind: input, shape index: {}]   ;;  %s947_s2 = inlined_call_operand.vmem [shape: f32[8,4], index: 2, kind: input, shape index: {}]   ;;  %s948_s3 = inlined_call_operand.vmem [shape: f32[8,4], index: 3, kind: input, shape index: {}]   ;;  %s949_s4 = inlined_call_operand.vmem [shape: f32[8,1], index: 4, kind: input, shape index: {}]   ;;  %s950_s5 = inlined_call_operand.hbm [shape: f32[2,4,256], index: 5, kind: output, shape index: {}]  }
   0x1   :  { %12 = vsyncpa [#allocation3 + $0x1], 0  ;;  %s821_s18 = smov 0   ;;  %s823_s19 = smov 0  }
   0x2   :  { %s825_s20 = smov 0   ;;  %s827_s21 = smov 0  }
   0x3   :  { %s829_s22 = smov 0   ;;  %s831_s23 = smov 0  }
   0x4 LB: > { %s612_s24 = sadd.s32 4294967295, %s786_s23   ;;  %s613_s25 = sadd.s32 4294967294, %s786_s23   ;;  %s786_s23 = sphi %s831_s23, %s18_s23   ;;  %s782_s22 = sphi %s829_s22, %s957_s22   ;;  %s778_s21 = sphi %s827_s21, %s956_s21   ;;  %s774_s20 = sphi %s825_s20, %s955_s20   ;;  %s770_s19 = sphi %s823_s19, %s954_s19   ;;  %s766_s18 = sphi %s821_s18, %s953_s18  }
   0x5   : > { %s30_s26 = sadd.s32 1, %s782_s22  ;;  %s158_s27 = sadd.s32 1, %s774_s20 }
   0x6   : > { %p32_p0 = scmp.ge.s32.totalorder %s30_s26, 2  ;;  %p168_p1 = scmp.ne.s32.totalorder %s774_s20, %s770_s19 }
   0x7   : > { %p169_p2 = scmp.eq.s32.totalorder %s612_s24, 1  ;;  %p174_p3 = scmp.ne.s32.totalorder %s770_s19, %s766_s18 }
   0x8   : > { %s959_s26 = smov (%p32_p0, %s30_s26), 0  ;;  %p175_p5 = scmp.eq.s32.totalorder %s613_s25, 1 }
   0x9   : > { %p861_p4 = por %p169_p2, %p168_p1  ;;  %s153_s29 = ssub.s32 %s782_s22, %s959_s26 }
   0xa   : > { %p616_p6 = scmp.ge.s32.totalorder %s786_s23, 1  ;;  %p156_p7 = scmp.eq.s32.totalorder %s153_s29, 0 }
   0xb   : > { %p868_p8 = por %p175_p5, %p174_p3  ;;  %p228_p9 = scmp.lt.s32.totalorder %s786_s23, 3 }
   0xc   : > { %s874_s6 = scalar_select %p156_p7, %s774_s20, %s158_s27  }
   0xd   : > { %p229_p10 = pnand %p616_p6, %p228_p9 }
   0xe   : > { %p270_p11 = scmp.lt.s32.totalorder (!%p229_p10), %s778_s21, 1  ;;  %v788_v0 = vmov (!%p229_p10), 0.0   ;;  %v456_v1 = vld [vmem:[%s949_s4] sm:$0xff] (!%p229_p10)  ;;  %v789_v2 = vmov (!%p229_p10), 0   ;;  %vm300_vm0 = vcmask (!%p229_p10), 1043456   ;;  %vm296_vm1 = vcmask (!%p229_p10), 31744  }
   0xf   : > { %232 = sbr.rel (%p229_p10) target bundleno = 301 (0x12d), region = 40  ;;  %369 = vmatprep.mubr.f32.mxu1 (!%p229_p10), %v788_v0  ;;  %449 = vmatprep.mubr.f32.mxu0 (!%p229_p10), %v788_v0  ;;  %v293_v7 = vld [vmem:[%s948_s3] sm:$0xff] (!%p229_p10)  ;;  %s266_s29 = sand.u32 (!%p229_p10), 1, %s770_s19  }
  0x10   : > { %697 = vset.pattern.permute.xlu0 (!%p229_p10), %v789_v2  ;;  %v292_v8 = vld [vmem:[%s947_s2] sm:$0xff] (!%p229_p10)  ;;  %s617_s7 = sshll.u32 (!%p229_p10), %s266_s29, 3  ;;  %s637_s8 = sshll.u32 (!%p229_p10), %s778_s21, 7 }
  0x11   : > { %459 = vperm.xlu0 (!%p229_p10), %697, %v456_v1   ;;  %s502_s14 = scalar_lea.sflag (!%p229_p10), [#allocation3], %s266_s29 }
  0x16   : > { %s271_s9 = scalar_select %p270_p11, %s778_s21, 1 }
  0x17   : > { %s790_s21 = smov [#allocation2]  }
  0x18   : > { %s635_s10 = sshll.u32 %s271_s9, 3  ;;  %s268_s9 = scalar_lea.vmem [#allocation2], %s617_s7 }
  0x19   : > { %s287_s13 = scalar_lea.vmem %s946_s1, %s635_s10  ;;  %s277_s16 = scalar_lea.vmem %s945_s0, %s635_s10 }
  0x1a   : > { %v291_v3 = vld [vmem:[%s287_s13] sm:$0xff]  ;;  %s518_s10 = sshll.u32 %s268_s9, 4  ;;  %s898_s13 = scalar_lea.hbm %s950_s5, %s637_s8  ;;  %s900_s10 = int_to_ptr.vmem [resolvable:$true] %s518_s10 }
  0x1b   : > { %v290_v4 = vld [vmem:[%s277_s16] sm:$0xff]  ;;  %v295_v5 = vcombine.high %v291_v3, %v291_v3  ;;  %s708_s15 = scalar_lea.vmem %s900_s10, 128  ;;  %s712_s16 = sshll.u32 %s790_s21, 4  ;;  %s713_s16 = int_to_ptr.vmem [resolvable:$false] %s712_s16 }
  0x1c   : > { %v377_v6 = vcombine.high %v290_v4, %v290_v4  ;;  %p709_p12 = scmp.ne.s32.totalorder %s900_s10, %s708_s15  ;;  %s714_s17 = scalar_lea.vmem %s713_s16, 256 }
  0x1d   : > { %622 = vmatprep.subr.msk.mxu1 %vm300_vm0, %v295_v5  ;;  %p715_p1 = scmp.lt.s32.totalorder %s900_s10, %s713_s16  ;;  %p716_p2 = scmp.lt.s32.totalorder %s714_s17, %s708_s15 }
  0x1e   : > { %625 = vmatprep.subr.msk.mxu0 %vm300_vm0, %v377_v6  ;;  %623 = vmatpush1.msk.msra.mxu1 %vm300_vm0, %v291_v3  ;;  %p710_p13 = pnand %p709_p12, %p861_p4 }
  0x1f   : > { %626 = vmatpush1.msk.msra.mxu0 %vm300_vm0, %v290_v4  ;;  %624 = vmatmul.mubr.msk.f32.vlgmr.msra.gmra.mrb[0].mxu1 %vm296_vm1, %v293_v7  ;;  %p717_p3 = por %p716_p2, %p715_p1 }
  0x20   : > { %627 = vmatmul.mubr.msk.f32.vlgmr.msra.gmra.mrb[0].mxu0 %vm296_vm1, %v292_v8  ;;  %p711_p0 = pneg %p710_p13 }
  0x22   : > { %p718_p5 = pnand %p717_p3, %p711_p0 }
  0x90   : > { %v460_v9 = vpop.permute.xlu0 %459 }
  0xf2   : > { %v371_v10 = vpop.f32.mrb[0].mxu1 }
  0xf3   : > { %v451_v11 = vpop.f32.mrb[0].mxu0  ;;  %v373_v13 = vpop.f32.mrb[1].mxu1 }
  0xf4   : > { %v452_v12 = vadd.f32 %v451_v11, %v371_v10  ;;  %v453_v14 = vpop.f32.mrb[1].mxu0 }
  0xf5   : > { %v454_v15 = vadd.f32 %v453_v14, %v373_v13 }
  0xf6   : > { %v462_v16 = vadd.f32 %v460_v9, %v452_v12 }
  0xf7   : > { %v463_v17 = vadd.f32 %v460_v9, %v454_v15 }
  0xf8   : > { %v628_v18 = vmul.f32 -1.442695, %v462_v16 }
  0xf9   : > { %v629_v19 = vmul.f32 -1.442695, %v463_v17 }
  0xfa   : > { %700 = vpow2.f32 %v628_v18 }
  0xfb   : > { %702 = vpow2.f32 %v629_v19 }
 0x104   : > { %v701_v20 = vpop.eup %700 }
 0x105   : > { %v703_v21 = vpop.eup %702  ;;  %v470_v22 = vadd.f32 1.0, %v701_v20 }
 0x106   : > { %v471_v23 = vadd.f32 1.0, %v703_v21 }
 0x107   : > { %704 = vrcp.f32 %v470_v22 }
 0x108   : > { %706 = vrcp.f32 %v471_v23 }
 0x111   : > { %v705_v24 = vpop.eup %704 }
 0x112   : > { %v707_v25 = vpop.eup %706  ;;  %v484_v26 = vsub.f32 1.0, %v705_v24  ;;  %v478_v29 = vrot.slane %v705_v24, 4 }
 0x113   : > { %v479_v27 = vrot.slane %v707_v25, 4  ;;  %v485_v28 = vsub.f32 1.0, %v707_v25 }
 0x114   : > { %v482_v33 = vmul.f32 %v478_v29, %v462_v16 }
 0x115   : > { %v488_v30 = vcombine.low %v484_v26, %v485_v28  ;;  %v483_v31 = vmul.f32 %v479_v27, %v463_v17 }
 0x117   : > { %v490_v32 = vmul.f32 %v488_v30, %v290_v4 }
 0x119   : > { %v492_v34 = vcombine.low %v490_v32, %v490_v32  ;;  %v495_v35 = vadd.f32 %v490_v32, %v483_v31 }
 0x11b   : > { %v494_v36 = vadd.f32 %v492_v34, %v482_v33 }
 0x11d   : > { %v498_v37 = vcombine.high %v494_v36, %v495_v35 }
 0x11f   : > { %500 = vst [vmem:[%s268_s9] sm:$0xff] %v498_v37 }
 0x120   : > { %721 = shalt.err (!%p718_p5)
}
 0x121   : > { %s722_s24 = scalar_lea.hbm %s898_s13, 128  ;;  %s726_s29 = scalar_lea.hbm %s950_s5, 256 }
 0x122   : > { %p723_p6 = scmp.ne.s32.totalorder %s898_s13, %s722_s24  ;;  %p727_p10 = scmp.lt.u32.totalorder %s898_s13, %s950_s5 }
 0x123   : > { %p728_p11 = scmp.lt.u32.totalorder %s726_s29, %s722_s24  ;;  %p730_p13 = scmp.lt.u32.totalorder %s722_s24, %s898_s13 }
 0x124   : > { %p724_p7 = pnand %p723_p6, %p861_p4 }
 0x125   : > { %p729_p12 = por %p728_p11, %p727_p10 }
 0x126   : > { %p725_p9 = pneg %p724_p7 }
 0x127   : > { %p731_p0 = por %p730_p13, %p729_p12 }
 0x129   : > { %p732_p1 = pnand %p731_p0, %p725_p9 }
 0x12b   : > { %735 = shalt.err (!%p732_p1)
}
 0x12c   : > { %640 = dma.vmem_to_hbm [thread:$0]  (%p861_p4), %s900_s10, 128, %s898_s13, %s502_s14  }
 0x12d PF: > { %p646_p2 = scmp.ge.s32.totalorder %s786_s23, 2  ;;  %s530_s9 = sand.u32 1, %s766_s18  }
 0x12e   : > { %s531_s11 = scalar_lea.sflag [#allocation3], %s530_s9 }
 0x12f   : > { %p643_p3 = pnand %p646_p2, %p868_p8 }
 0x131   : > { %761 = dma.done.wait (!%p643_p3), %s531_s11, 128  }
 0x132   : > { %763 = vsyncadd (!%p643_p3), %s531_s11, 4294967168  ;;  %s18_s23 = sadd.s32 1, %s786_s23   ;;  %s953_s18 = smov %s770_s19 }
 0x133   : > { %p15_p5 = scmp.ge.s32.totalorder %s18_s23, 4   ;;  %s954_s19 = smov %s774_s20 }
 0x134   : > { %s955_s20 = smov %s874_s6  ;;  %s956_s21 = smov %s782_s22 }
 0x135   : > { %s957_s22 = smov %s959_s26  ;;  %17 = sbr.rel (!%p15_p5) target bundleno = 4 (0x4), region = 78 }
 0x13c   :  { %536 = vsyncpa [#allocation3], 1 }
 0x13d   :  { %538 = vsyncpa [#allocation3 + $0x1], 1 }

</bundles_post_ra>
